<compile_context>
chip_gen: v7x
topology: tpu7x:2x2x1
jax: 0.10.0
libtpu: 0.0.40
codegen_flags: <defaults>
</compile_context>

<pallas_src>
import functools

import jax
import jax.numpy as jnp
from jax import lax
from jax.experimental import pallas as pl
from jax.experimental.pallas import tpu as pltpu

LEAKY_SLOPE = 0.01   # nn.LeakyReLU default
BN_EPS = 1e-5        # nn.BatchNorm2d default


# --------------------------- kernel 1: conv1 + stats --------------------------

def _conv1_stats_kernel(f0_ref, f1_ref, a1a_ref, a1b_ref,
                        y1_ref, sum_ref, sq_ref):
    """grid = (m_tile,).  conv1 as a dense matmul on the flattened sample,
    bf16 spill of y1, f32 accumulation of BatchNorm batch statistics."""
    m = pl.program_id(0)

    @pl.when(m == 0)
    def _init_stats():
        sum_ref[...] = jnp.zeros_like(sum_ref)
        sq_ref[...] = jnp.zeros_like(sq_ref)

    y1 = (jnp.dot(f0_ref[...], a1a_ref[...], preferred_element_type=jnp.float32) +
          jnp.dot(f1_ref[...], a1b_ref[...], preferred_element_type=jnp.float32))
    y1_ref[...] = y1.astype(y1_ref.dtype)                     # bf16 HBM spill
    # zero-padded rows produce exactly zero -> no masking needed for the stats.
    sum_ref[...] += jnp.sum(y1, axis=0, keepdims=True)
    sq_ref[...] += jnp.sum(y1 * y1, axis=0, keepdims=True)


# ----------------------- kernel 2: BN -> conv2/MLP -> tanh --------------------

def _forward_kernel(y1_ref, scale_ref, shift_ref, a2w1_ref, w2_ref, w3_ref,
                    o_ref):
    """grid = (m_tile,), fully parallel.  BN+ReLU then the fused
    conv2*Linear1 matrix, LeakyReLU, Linear2, LeakyReLU, Linear3, tanh."""
    h = jnp.maximum(y1_ref[...].astype(jnp.float32) * scale_ref[...]
                    + shift_ref[...], 0.0)                    # BN + ReLU
    h = jnp.dot(h.astype(jnp.bfloat16), a2w1_ref[...],
                preferred_element_type=jnp.float32)           # conv2 (.) Linear1
    h = jnp.where(h > 0, h, LEAKY_SLOPE * h)
    h = jnp.dot(h.astype(jnp.bfloat16), w2_ref[...],
                preferred_element_type=jnp.float32)           # Linear 2
    h = jnp.where(h > 0, h, LEAKY_SLOPE * h)
    h = jnp.dot(h.astype(jnp.bfloat16), w3_ref[...],
                preferred_element_type=jnp.float32)           # Linear 3
    o_ref[...] = jnp.tanh(h).astype(o_ref.dtype)


# ------------------------------ parameters ------------------------------------

def init_params(config, key):
    c_in = config["D_MODEL_F"] * 2
    c1, c2 = config["COMPACT_DIMS"]
    w = config["FINE_WINDOW_SIZE"]
    mlp_in = round(w / 4 + 0.5) ** 2 * config["COMPACT_DIMS"][-1]
    d0, d1, d2 = config["MLP_DIMS"]
    k1, k2, k3, k4, k5 = jax.random.split(key, 5)
    return {
        # conv weights in HWIO; equivalent torch OIHW weight = transpose(3,2,0,1)
        "conv1_w": jax.random.normal(k1, (3, 3, c_in, c1), jnp.float32) * 0.1,
        "conv2_w": jax.random.normal(k2, (3, 3, c1, c2), jnp.float32) * 0.1,
        "bn_gamma": jnp.ones((c1,), jnp.float32),     # BatchNorm2d default init
        "bn_beta": jnp.zeros((c1,), jnp.float32),
        # Linear weights stored as [in, out] (= torch weight.T), bias=False;
        # mlp_w1 rows follow the torch NCHW flatten order (c2, h2, w2).
        "mlp_w1": jax.random.normal(k3, (mlp_in, d0), jnp.float32) * 0.1,
        "mlp_w2": jax.random.normal(k4, (d0, d1), jnp.float32) * 0.1,
        "mlp_w3": jax.random.normal(k5, (d1, d2), jnp.float32) * 0.1,
    }


def _conv_out(n):  # conv3x3, stride 2, padding 1
    return (n - 1) // 2 + 1


def prepare_kernel_params(params, config):
    """One-time: fold layout permutations, both convolutions and the first
    Linear into dense matrices acting on flat rows."""
    c = config["D_MODEL_F"]
    hw = config["FINE_WINDOW_SIZE"]
    c1, c2 = config["COMPACT_DIMS"]
    h1 = w1 = _conv_out(hw)
    h2 = w2 = _conv_out(h1)
    cin = 2 * c

    def conv_as_matrix(basis_nhwc, w_hwio):
        out = lax.conv_general_dilated(
            basis_nhwc, w_hwio, window_strides=(2, 2),
            padding=((1, 1), (1, 1)),
            dimension_numbers=("NHWC", "HWIO", "NHWC"))
        return out.reshape(out.shape[0], -1)             # NHWC-flat outputs

    # conv1: rows indexed by the NCHW-flat concatenated input (feat0 then feat1).
    n_in = cin * hw * hw
    basis1 = jnp.eye(n_in, dtype=jnp.float32).reshape(n_in, cin, hw, hw)
    basis1 = jnp.transpose(basis1, (0, 2, 3, 1))         # NCHW basis -> NHWC layout
    a1 = conv_as_matrix(basis1, params["conv1_w"])       # [n_in, h1*w1*c1]
    chw = c * hw * hw
    a1a, a1b = a1[:chw], a1[chw:]

    # conv2: rows indexed by the NHWC-flat conv1 output.
    f1dim = h1 * w1 * c1
    basis2 = jnp.eye(f1dim, dtype=jnp.float32).reshape(f1dim, h1, w1, c1)
    a2 = conv_as_matrix(basis2, params["conv2_w"])       # [f1dim, h2*w2*c2]

    # fold the torch NCHW flatten into the first Linear's row order (-> NHWC),
    # then fold conv2 into Linear1 (exact in f32: no nonlinearity in between).
    d0 = params["mlp_w1"].shape[1]
    w1p = (params["mlp_w1"].reshape(c2, h2, w2, d0)
           .transpose(1, 2, 0, 3).reshape(h2 * w2 * c2, d0))
    a2w1 = a2 @ w1p                                      # [f1dim, d0]

    bf16 = jnp.bfloat16
    return {
        "a1a": a1a.astype(bf16), "a1b": a1b.astype(bf16),
        "a2w1": a2w1.astype(bf16),
        "w2": params["mlp_w2"].astype(bf16), "w3": params["mlp_w3"].astype(bf16),
        "bn_gamma": params["bn_gamma"].astype(jnp.float32),
        "bn_beta": params["bn_beta"].astype(jnp.float32),
    }


# ------------------------------ forward pass ----------------------------------

def _round_up(x, m):
    return ((x + m - 1) // m) * m


@jax.jit
def feat_regressor_forward(kparams, feat0, feat1):
    """feat0, feat1: [M, C, H, W] (NCHW) -> [M, 2] float32."""
    m_true, c, h, w = feat0.shape
    chw = c * h * w
    f1dim = kparams["a1a"].shape[1]
    c1 = kparams["bn_gamma"].shape[0]
    h1w1 = f1dim // c1
    n_out = kparams["w3"].shape[1]

    # The kernel only ever uses the inputs as bf16 MXU operands.
    f0 = feat0.astype(jnp.bfloat16).reshape(m_true, chw)   # torch NCHW flatten
    f1 = feat1.astype(jnp.bfloat16).reshape(m_true, chw)

    tm = min(2048, _round_up(m_true, 8))   # samples per grid step
    mpad = _round_up(m_true, tm)
    if mpad != m_true:                     # zero rows contribute 0 to BN stats
        f0 = jnp.pad(f0, ((0, mpad - m_true), (0, 0)))
        f1 = jnp.pad(f1, ((0, mpad - m_true), (0, 0)))
    n_tiles = mpad // tm

    def const_spec(arr):
        return pl.BlockSpec(arr.shape, lambda m, _nd=arr.ndim: (0,) * _nd)

    row_in = pl.BlockSpec((tm, chw), lambda m: (m, 0))
    row_y1 = pl.BlockSpec((tm, f1dim), lambda m: (m, 0))
    stat_spec = pl.BlockSpec((1, f1dim), lambda m: (0, 0))   # resident accumulator

    vmem_limit = 32 * 1024 * 1024   # explicit: v5e default scoped VMEM is 16 MiB

    # ---- pass 1: conv1 as matmul, bf16 y1 spill, batch statistics ----
    y1, lane_sum, lane_sq = pl.pallas_call(
        _conv1_stats_kernel,
        out_shape=(jax.ShapeDtypeStruct((mpad, f1dim), jnp.bfloat16),
                   jax.ShapeDtypeStruct((1, f1dim), jnp.float32),
                   jax.ShapeDtypeStruct((1, f1dim), jnp.float32)),
        grid_spec=pltpu.PrefetchScalarGridSpec(
            num_scalar_prefetch=0, grid=(n_tiles,),
            in_specs=[row_in, row_in,
                      const_spec(kparams["a1a"]), const_spec(kparams["a1b"])],
            out_specs=[row_y1, stat_spec, stat_spec]),
        compiler_params=pltpu.CompilerParams(
            # the M axis carries the BN-stat accumulation -> must stay "arbitrary"
            dimension_semantics=("arbitrary",),
            vmem_limit_bytes=vmem_limit),
    )(f0, f1, kparams["a1a"], kparams["a1b"])

    # ---- tiny XLA on [1, f1dim] arrays: hoisted BN scale / shift ----
    inv_count = 1.0 / float(m_true * h1w1)
    mean_c = lane_sum.reshape(h1w1, c1).sum(axis=0) * inv_count
    esq_c = lane_sq.reshape(h1w1, c1).sum(axis=0) * inv_count
    var_c = esq_c - mean_c * mean_c                 # biased var (BN training mode)
    scale_c = kparams["bn_gamma"] * lax.rsqrt(var_c + BN_EPS)
    shift_c = kparams["bn_beta"] - mean_c * scale_c
    scale_l = jnp.tile(scale_c, h1w1).reshape(1, f1dim)   # lane layout: l % c1
    shift_l = jnp.tile(shift_c, h1w1).reshape(1, f1dim)

    # ---- pass 2: streaming BN/ReLU/conv2*Linear1/MLP/tanh, fully parallel ----
    out = pl.pallas_call(
        _forward_kernel,
        out_shape=jax.ShapeDtypeStruct((mpad, n_out), jnp.float32),
        grid_spec=pltpu.PrefetchScalarGridSpec(
            num_scalar_prefetch=0, grid=(n_tiles,),
            in_specs=[row_y1, const_spec(scale_l), const_spec(shift_l),
                      const_spec(kparams["a2w1"]), const_spec(kparams["w2"]),
                      const_spec(kparams["w3"])],
            out_specs=pl.BlockSpec((tm, n_out), lambda m: (m, 0))),
        compiler_params=pltpu.CompilerParams(
            dimension_semantics=("parallel",),        # both TCs on v7x
            vmem_limit_bytes=vmem_limit),
    )(y1, scale_l, shift_l, kparams["a2w1"], kparams["w2"], kparams["w3"])

    return out[:m_true]


# ------------------------------ pure-JAX reference -----------------------------

def reference_forward(params, feat0, feat1):
    """f32 reference matching the PyTorch module (training-mode BatchNorm)."""
    x = jnp.concatenate([feat0, feat1], axis=1)           # [M, 2C, H, W]
    x = jnp.transpose(x, (0, 2, 3, 1))                    # NHWC
    y = lax.conv_general_dilated(x, params["conv1_w"], (2, 2), ((1, 1), (1, 1)),
                                 dimension_numbers=("NHWC", "HWIO", "NHWC"))
    mean = jnp.mean(y, axis=(0, 1, 2), keepdims=True)
    var = jnp.mean((y - mean) ** 2, axis=(0, 1, 2), keepdims=True)
    y = (y - mean) * lax.rsqrt(var + BN_EPS)
    y = y * params["bn_gamma"].reshape(1, 1, 1, -1) + params["bn_beta"].reshape(1, 1, 1, -1)
    y = jnp.maximum(y, 0.0)
    y = lax.conv_general_dilated(y, params["conv2_w"], (2, 2), ((1, 1), (1, 1)),
                                 dimension_numbers=("NHWC", "HWIO", "NHWC"))
    flat = jnp.transpose(y, (0, 3, 1, 2)).reshape(y.shape[0], -1)   # torch view(M,-1)
    h = flat @ params["mlp_w1"]
    h = jnp.where(h > 0, h, LEAKY_SLOPE * h)
    h = h @ params["mlp_w2"]
    h = jnp.where(h > 0, h, LEAKY_SLOPE * h)
    h = h @ params["mlp_w3"]
    return jnp.tanh(h)


# --------------------------------- main -----------------------------------------

if __name__ == "__main__":
    config = {
        "FINE_WINDOW_SIZE": 8,   # fine window W
        "D_MODEL_F": 4,          # fine feature channels C
        "COMPACT_DIMS": [8, 16],
        "MLP_DIMS": [64, 32, 2],
    }
    key = jax.random.PRNGKey(0)
    params = init_params(config, jax.random.fold_in(key, 123))
    kparams = prepare_kernel_params(params, config)

    C, Wsz = config["D_MODEL_F"], config["FINE_WINDOW_SIZE"]

    ok = True
    for M in (4, 3000):          # single-tile path, and padded multi-tile path
        ka, kb = jax.random.split(jax.random.fold_in(key, M))
        feat0 = jax.random.normal(ka, (M, C, Wsz, Wsz), jnp.float32)
        feat1 = jax.random.normal(kb, (M, C, Wsz, Wsz), jnp.float32)

        out = feat_regressor_forward(kparams, feat0, feat1)
        jax.block_until_ready(out)
        assert out.shape == (M, 2) and out.dtype == jnp.float32

        ref = reference_forward(params, feat0, feat1)
        err = float(jnp.max(jnp.abs(out - ref)))
        ok = ok and err < 1e-1   # bf16 inputs / matmul operands -> loose tolerance

    assert ok
    print("KERNEL_OK")
</pallas_src>

<mosaic_0001>
module attributes {stable_mosaic.version = 11 : i64} {
  func.func @_conv1_stats_kernel(%arg0: i32, %arg1: memref<8x256xbf16, #tpu.memory_space<vmem>>, %arg2: memref<8x256xbf16, #tpu.memory_space<vmem>>, %arg3: memref<256x128xbf16, #tpu.memory_space<vmem>>, %arg4: memref<256x128xbf16, #tpu.memory_space<vmem>>, %arg5: memref<8x128xbf16, #tpu.memory_space<vmem>>, %arg6: memref<1x128xf32, #tpu.memory_space<vmem>>, %arg7: memref<1x128xf32, #tpu.memory_space<vmem>>) attributes {dimension_semantics = [#tpu.dimension_semantics<arbitrary>], iteration_bounds = array<i64: 1>, scalar_prefetch = 0 : i64, scratch_operands = 0 : i64, tpu.core_type = #tpu.core_type<tc>, window_params = [{transform_indices = @transform_0, window_bounds = array<i64: 8, 256>}, {transform_indices = @transform_1, window_bounds = array<i64: 8, 256>}, {pipeline_mode = #tpu.pipeline_mode<synchronous>, transform_indices = @transform_2, window_bounds = array<i64: 256, 128>}, {pipeline_mode = #tpu.pipeline_mode<synchronous>, transform_indices = @transform_3, window_bounds = array<i64: 256, 128>}, {transform_indices = @transform_4, window_bounds = array<i64: 8, 128>}, {pipeline_mode = #tpu.pipeline_mode<synchronous>, transform_indices = @transform_5, window_bounds = array<i64: 1, 128>}, {pipeline_mode = #tpu.pipeline_mode<synchronous>, transform_indices = @transform_6, window_bounds = array<i64: 1, 128>}]} {
    %c0_i32 = arith.constant 0 : i32
    %0 = arith.cmpi eq, %arg0, %c0_i32 : i32
    %1 = arith.extui %0 : i1 to i32
    %c0_i32_0 = arith.constant 0 : i32
    %2 = arith.cmpi ne, %1, %c0_i32_0 : i32
    scf.if %2 {
      %cst_21 = arith.constant 0.000000e+00 : f32
      %23 = vector.broadcast %cst_21 : f32 to vector<1x128xf32>
      %c0_22 = arith.constant 0 : index
      %c0_23 = arith.constant 0 : index
      %24 = vector.load %arg6[%c0_22, %c0_23] : memref<1x128xf32, #tpu.memory_space<vmem>>, vector<1x128xf32>
      tpu.vector_store %arg6[%c0_22, %c0_23], %23 {strides = array<i32>} : memref<1x128xf32, #tpu.memory_space<vmem>>, vector<1x128xf32>,
      %cst_24 = arith.constant 0.000000e+00 : f32
      %25 = vector.broadcast %cst_24 : f32 to vector<1x128xf32>
      %c0_25 = arith.constant 0 : index
      %c0_26 = arith.constant 0 : index
      %26 = vector.load %arg7[%c0_25, %c0_26] : memref<1x128xf32, #tpu.memory_space<vmem>>, vector<1x128xf32>
      tpu.vector_store %arg7[%c0_25, %c0_26], %25 {strides = array<i32>} : memref<1x128xf32, #tpu.memory_space<vmem>>, vector<1x128xf32>,
    } else {
    }
    %c0 = arith.constant 0 : index
    %c0_1 = arith.constant 0 : index
    %3 = vector.load %arg1[%c0, %c0_1] : memref<8x256xbf16, #tpu.memory_space<vmem>>, vector<8x256xbf16>
    %c0_2 = arith.constant 0 : index
    %c0_3 = arith.constant 0 : index
    %4 = vector.load %arg3[%c0_2, %c0_3] : memref<256x128xbf16, #tpu.memory_space<vmem>>, vector<256x128xbf16>
    %cst = arith.constant dense<0.000000e+00> : vector<8x128xf32>
    %5 = tpu.matmul %3, %4, %cst {dimension_numbers = #tpu.dot_dimension_numbers<[1], [0], [0], [1], [0, 0, 1, 1], [], []>} : vector<8x256xbf16>, vector<256x128xbf16>, vector<8x128xf32> -> vector<8x128xf32>
    %c0_4 = arith.constant 0 : index
    %c0_5 = arith.constant 0 : index
    %6 = vector.load %arg2[%c0_4, %c0_5] : memref<8x256xbf16, #tpu.memory_space<vmem>>, vector<8x256xbf16>
    %c0_6 = arith.constant 0 : index
    %c0_7 = arith.constant 0 : index
    %7 = vector.load %arg4[%c0_6, %c0_7] : memref<256x128xbf16, #tpu.memory_space<vmem>>, vector<256x128xbf16>
    %cst_8 = arith.constant dense<0.000000e+00> : vector<8x128xf32>
    %8 = tpu.matmul %6, %7, %cst_8 {dimension_numbers = #tpu.dot_dimension_numbers<[1], [0], [0], [1], [0, 0, 1, 1], [], []>} : vector<8x256xbf16>, vector<256x128xbf16>, vector<8x128xf32> -> vector<8x128xf32>
    %9 = arith.addf %5, %8 : vector<8x128xf32>
    %10 = arith.truncf %9 : vector<8x128xf32> to vector<8x128xbf16>
    %c0_9 = arith.constant 0 : index
    %c0_10 = arith.constant 0 : index
    %11 = vector.load %arg5[%c0_9, %c0_10] : memref<8x128xbf16, #tpu.memory_space<vmem>>, vector<8x128xbf16>
    tpu.vector_store %arg5[%c0_9, %c0_10], %10 {strides = array<i32>} : memref<8x128xbf16, #tpu.memory_space<vmem>>, vector<8x128xbf16>,
    %c0_11 = arith.constant 0 : index
    %c0_12 = arith.constant 0 : index
    %12 = vector.load %arg6[%c0_11, %c0_12] : memref<1x128xf32, #tpu.memory_space<vmem>>, vector<1x128xf32>
    %cst_13 = arith.constant dense<0.000000e+00> : vector<128xf32>
    %13 = vector.multi_reduction <add>, %9, %cst_13 [0] : vector<8x128xf32> to vector<128xf32>
    %14 = vector.shape_cast %13 : vector<128xf32> to vector<1x128xf32>
    %15 = arith.addf %12, %14 : vector<1x128xf32>
    %c0_14 = arith.constant 0 : index
    %c0_15 = arith.constant 0 : index
    %16 = vector.load %arg6[%c0_14, %c0_15] : memref<1x128xf32, #tpu.memory_space<vmem>>, vector<1x128xf32>
    tpu.vector_store %arg6[%c0_14, %c0_15], %15 {strides = array<i32>} : memref<1x128xf32, #tpu.memory_space<vmem>>, vector<1x128xf32>,
    %c0_16 = arith.constant 0 : index
    %c0_17 = arith.constant 0 : index
    %17 = vector.load %arg7[%c0_16, %c0_17] : memref<1x128xf32, #tpu.memory_space<vmem>>, vector<1x128xf32>
    %18 = arith.mulf %9, %9 : vector<8x128xf32>
    %cst_18 = arith.constant dense<0.000000e+00> : vector<128xf32>
    %19 = vector.multi_reduction <add>, %18, %cst_18 [0] : vector<8x128xf32> to vector<128xf32>
    %20 = vector.shape_cast %19 : vector<128xf32> to vector<1x128xf32>
    %21 = arith.addf %17, %20 : vector<1x128xf32>
    %c0_19 = arith.constant 0 : index
    %c0_20 = arith.constant 0 : index
    %22 = vector.load %arg7[%c0_19, %c0_20] : memref<1x128xf32, #tpu.memory_space<vmem>>, vector<1x128xf32>
    tpu.vector_store %arg7[%c0_19, %c0_20], %21 {strides = array<i32>} : memref<1x128xf32, #tpu.memory_space<vmem>>, vector<1x128xf32>,
    return
  }
  func.func @transform_0(%arg0: i32) -> (i32, i32) {
    %c0_i32 = arith.constant 0 : i32
    %c0_i32_0 = arith.constant 0 : i32
    return %arg0, %c0_i32 : i32, i32
  }
  func.func @transform_1(%arg0: i32) -> (i32, i32) {
    %c0_i32 = arith.constant 0 : i32
    %c0_i32_0 = arith.constant 0 : i32
    return %arg0, %c0_i32 : i32, i32
  }
  func.func @transform_2(%arg0: i32) -> (i32, i32) {
    %c0_i32 = arith.constant 0 : i32
    %c0_i32_0 = arith.constant 0 : i32
    %c0_i32_1 = arith.constant 0 : i32
    return %c0_i32, %c0_i32_0 : i32, i32
  }
  func.func @transform_3(%arg0: i32) -> (i32, i32) {
    %c0_i32 = arith.constant 0 : i32
    %c0_i32_0 = arith.constant 0 : i32
    %c0_i32_1 = arith.constant 0 : i32
    return %c0_i32, %c0_i32_0 : i32, i32
  }
  func.func @transform_4(%arg0: i32) -> (i32, i32) {
    %c0_i32 = arith.constant 0 : i32
    %c0_i32_0 = arith.constant 0 : i32
    return %arg0, %c0_i32 : i32, i32
  }
  func.func @transform_5(%arg0: i32) -> (i32, i32) {
    %c0_i32 = arith.constant 0 : i32
    %c0_i32_0 = arith.constant 0 : i32
    %c0_i32_1 = arith.constant 0 : i32
    return %c0_i32, %c0_i32_0 : i32, i32
  }
  func.func @transform_6(%arg0: i32) -> (i32, i32) {
    %c0_i32 = arith.constant 0 : i32
    %c0_i32_0 = arith.constant 0 : i32
    %c0_i32_1 = arith.constant 0 : i32
    return %c0_i32, %c0_i32_0 : i32, i32
  }
}

module attributes {stable_mosaic.version = 11 : i64} {
  func.func @_forward_kernel(%arg0: i32, %arg1: memref<8x128xbf16, #tpu.memory_space<vmem>>, %arg2: memref<1x128xf32, #tpu.memory_space<vmem>>, %arg3: memref<1x128xf32, #tpu.memory_space<vmem>>, %arg4: memref<128x64xbf16, #tpu.memory_space<vmem>>, %arg5: memref<64x32xbf16, #tpu.memory_space<vmem>>, %arg6: memref<32x2xbf16, #tpu.memory_space<vmem>>, %arg7: memref<8x2xf32, #tpu.memory_space<vmem>>) attributes {dimension_semantics = [#tpu.dimension_semantics<parallel>], iteration_bounds = array<i64: 1>, scalar_prefetch = 0 : i64, scratch_operands = 0 : i64, tpu.core_type = #tpu.core_type<tc>, window_params = [{transform_indices = @transform_0, window_bounds = array<i64: 8, 128>}, {pipeline_mode = #tpu.pipeline_mode<synchronous>, transform_indices = @transform_1, window_bounds = array<i64: 1, 128>}, {pipeline_mode = #tpu.pipeline_mode<synchronous>, transform_indices = @transform_2, window_bounds = array<i64: 1, 128>}, {pipeline_mode = #tpu.pipeline_mode<synchronous>, transform_indices = @transform_3, window_bounds = array<i64: 128, 64>}, {pipeline_mode = #tpu.pipeline_mode<synchronous>, transform_indices = @transform_4, window_bounds = array<i64: 64, 32>}, {pipeline_mode = #tpu.pipeline_mode<synchronous>, transform_indices = @transform_5, window_bounds = array<i64: 32, 2>}, {transform_indices = @transform_6, window_bounds = array<i64: 8, 2>}]} {
    %c0 = arith.constant 0 : index
    %c0_0 = arith.constant 0 : index
    %0 = vector.load %arg1[%c0, %c0_0] : memref<8x128xbf16, #tpu.memory_space<vmem>>, vector<8x128xbf16>
    %1 = arith.extf %0 : vector<8x128xbf16> to vector<8x128xf32>
    %c0_1 = arith.constant 0 : index
    %c0_2 = arith.constant 0 : index
    %2 = vector.load %arg2[%c0_1, %c0_2] : memref<1x128xf32, #tpu.memory_space<vmem>>, vector<1x128xf32>
    %3 = vector.broadcast %2 : vector<1x128xf32> to vector<8x128xf32>
    %4 = arith.mulf %1, %3 : vector<8x128xf32>
    %c0_3 = arith.constant 0 : index
    %c0_4 = arith.constant 0 : index
    %5 = vector.load %arg3[%c0_3, %c0_4] : memref<1x128xf32, #tpu.memory_space<vmem>>, vector<1x128xf32>
    %6 = vector.broadcast %5 : vector<1x128xf32> to vector<8x128xf32>
    %7 = arith.addf %4, %6 : vector<8x128xf32>
    %cst = arith.constant 0.000000e+00 : f32
    %8 = vector.broadcast %cst : f32 to vector<8x128xf32>
    %9 = arith.maximumf %7, %8 : vector<8x128xf32>
    %10 = arith.truncf %9 : vector<8x128xf32> to vector<8x128xbf16>
    %c0_5 = arith.constant 0 : index
    %c0_6 = arith.constant 0 : index
    %11 = vector.load %arg4[%c0_5, %c0_6] : memref<128x64xbf16, #tpu.memory_space<vmem>>, vector<128x64xbf16>
    %cst_7 = arith.constant dense<0.000000e+00> : vector<8x64xf32>
    %12 = tpu.matmul %10, %11, %cst_7 {dimension_numbers = #tpu.dot_dimension_numbers<[1], [0], [0], [1], [0, 0, 1, 1], [], []>} : vector<8x128xbf16>, vector<128x64xbf16>, vector<8x64xf32> -> vector<8x64xf32>
    %cst_8 = arith.constant 0.000000e+00 : f32
    %13 = vector.broadcast %cst_8 : f32 to vector<8x64xf32>
    %14 = arith.cmpf ogt, %12, %13 : vector<8x64xf32>
    %cst_9 = arith.constant 0.00999999977 : f32
    %15 = vector.broadcast %cst_9 : f32 to vector<8x64xf32>
    %16 = arith.mulf %15, %12 : vector<8x64xf32>
    %17 = arith.select %14, %12, %16 : vector<8x64xi1>, vector<8x64xf32>
    %18 = arith.truncf %17 : vector<8x64xf32> to vector<8x64xbf16>
    %c0_10 = arith.constant 0 : index
    %c0_11 = arith.constant 0 : index
    %19 = vector.load %arg5[%c0_10, %c0_11] : memref<64x32xbf16, #tpu.memory_space<vmem>>, vector<64x32xbf16>
    %cst_12 = arith.constant dense<0.000000e+00> : vector<8x32xf32>
    %20 = tpu.matmul %18, %19, %cst_12 {dimension_numbers = #tpu.dot_dimension_numbers<[1], [0], [0], [1], [0, 0, 1, 1], [], []>} : vector<8x64xbf16>, vector<64x32xbf16>, vector<8x32xf32> -> vector<8x32xf32>
    %cst_13 = arith.constant 0.000000e+00 : f32
    %21 = vector.broadcast %cst_13 : f32 to vector<8x32xf32>
    %22 = arith.cmpf ogt, %20, %21 : vector<8x32xf32>
    %cst_14 = arith.constant 0.00999999977 : f32
    %23 = vector.broadcast %cst_14 : f32 to vector<8x32xf32>
    %24 = arith.mulf %23, %20 : vector<8x32xf32>
    %25 = arith.select %22, %20, %24 : vector<8x32xi1>, vector<8x32xf32>
    %26 = arith.truncf %25 : vector<8x32xf32> to vector<8x32xbf16>
    %c0_15 = arith.constant 0 : index
    %c0_16 = arith.constant 0 : index
    %27 = vector.load %arg6[%c0_15, %c0_16] : memref<32x2xbf16, #tpu.memory_space<vmem>>, vector<32x2xbf16>
    %cst_17 = arith.constant dense<0.000000e+00> : vector<8x2xf32>
    %28 = tpu.matmul %26, %27, %cst_17 {dimension_numbers = #tpu.dot_dimension_numbers<[1], [0], [0], [1], [0, 0, 1, 1], [], []>} : vector<8x32xbf16>, vector<32x2xbf16>, vector<8x2xf32> -> vector<8x2xf32>
    %29 = math.tanh %28 : vector<8x2xf32>
    %c0_18 = arith.constant 0 : index
    %c0_19 = arith.constant 0 : index
    %30 = vector.load %arg7[%c0_18, %c0_19] : memref<8x2xf32, #tpu.memory_space<vmem>>, vector<8x2xf32>
    tpu.vector_store %arg7[%c0_18, %c0_19], %29 {strides = array<i32>} : memref<8x2xf32, #tpu.memory_space<vmem>>, vector<8x2xf32>,
    return
  }
  func.func @transform_0(%arg0: i32) -> (i32, i32) {
    %c0_i32 = arith.constant 0 : i32
    %c0_i32_0 = arith.constant 0 : i32
    return %arg0, %c0_i32 : i32, i32
  }
  func.func @transform_1(%arg0: i32) -> (i32, i32) {
    %c0_i32 = arith.constant 0 : i32
    %c0_i32_0 = arith.constant 0 : i32
    %c0_i32_1 = arith.constant 0 : i32
    return %c0_i32, %c0_i32_0 : i32, i32
  }
  func.func @transform_2(%arg0: i32) -> (i32, i32) {
    %c0_i32 = arith.constant 0 : i32
    %c0_i32_0 = arith.constant 0 : i32
    %c0_i32_1 = arith.constant 0 : i32
    return %c0_i32, %c0_i32_0 : i32, i32
  }
  func.func @transform_3(%arg0: i32) -> (i32, i32) {
    %c0_i32 = arith.constant 0 : i32
    %c0_i32_0 = arith.constant 0 : i32
    %c0_i32_1 = arith.constant 0 : i32
    return %c0_i32, %c0_i32_0 : i32, i32
  }
  func.func @transform_4(%arg0: i32) -> (i32, i32) {
    %c0_i32 = arith.constant 0 : i32
    %c0_i32_0 = arith.constant 0 : i32
    %c0_i32_1 = arith.constant 0 : i32
    return %c0_i32, %c0_i32_0 : i32, i32
  }
  func.func @transform_5(%arg0: i32) -> (i32, i32) {
    %c0_i32 = arith.constant 0 : i32
    %c0_i32_0 = arith.constant 0 : i32
    %c0_i32_1 = arith.constant 0 : i32
    return %c0_i32, %c0_i32_0 : i32, i32
  }
  func.func @transform_6(%arg0: i32) -> (i32, i32) {
    %c0_i32 = arith.constant 0 : i32
    %c0_i32_0 = arith.constant 0 : i32
    return %arg0, %c0_i32 : i32, i32
  }
}

</mosaic_0001>

<bundles_post_ra>
// kernel: tile.13
= control target key start
LH: loop header
LB: loop body
LE: loop exit
PB: predicated region body
PF: predicated region fallthrough
CT: control target
= control target key end

     0   :  { %s28_s0 = inlined_call_operand.vmem [shape: f32[8], index: 0, kind: input, shape index: {}]   ;;  %s29_s1 = inlined_call_operand.vmem [shape: f32[16,8], index: 1, kind: output, shape index: {}]  }
   0x1   :  { %v4_v0 = vld [vmem:[%s28_s0] ss:$0 sm:$0xff] }
   0x2   :  { %5 = vst [vmem:[%s29_s1] sm:$0xff] %v4_v0  ;;  %8 = vst [vmem:[%s29_s1 + $0x8] sm:$0xff] %v4_v0 }

// kernel: tile.14
= control target key start
LH: loop header
LB: loop body
LE: loop exit
PB: predicated region body
PF: predicated region fallthrough
CT: control target
= control target key end

     0   :  { %s131_s10 = smov 120   ;;  %s132_s11 = smov 104   ;;  %vm3_vm0 = vcmask 64512   ;;  %vm9_vm1 = vcmask 1048512   ;;  %vm15_vm2 = vcmask 982912   ;;  %vm21_vm3 = vcmask 917312   ;;  %s207_s0 = inlined_call_operand.vmem [shape: f32[16,8], index: 0, kind: input, shape index: {}]   ;;  %s208_s1 = inlined_call_operand.vmem [shape: f32[1,128], index: 1, kind: output, shape index: {}]  }
   0x1   :  { %v101_v0 = vld [vmem:[%s207_s0 + $0xf] sm:$0x1]   ;;  %v103_v1 = vld [vmem:[%s207_s0 + $0xd] sm:$0x1]   ;;  %v102_v2 = vld [vmem:[%s207_s0 + $0xe] sm:$0x1]  }
   0x2   :  { %7 = vrot.lane.b32.xlu0 %v101_v0, %s131_s10  ;;  %19 = vrot.lane.b32.xlu1 %v103_v1, %s132_s11  ;;  %v104_v3 = vld [vmem:[%s207_s0 + $0xc] sm:$0x1]   ;;  %s133_s16 = smov 112   ;;  %s134_s17 = smov 96   ;;  %v105_v4 = vld [vmem:[%s207_s0 + $0xb] sm:$0x1]  }
   0x3   :  { %v106_v5 = vld [vmem:[%s207_s0 + $0xa] sm:$0x1]   ;;  %v2_v6 = vld [vmem:[%s207_s0] sm:$0x1]   ;;  %s135_s24 = smov 88   ;;  %s136_s25 = smov 80  }
   0x4   :  { %4 = vst.msk [vmem:[#allocation0] sm:$0x1] %vm3_vm0, %v2_v6   ;;  %v107_v7 = vld [vmem:[%s207_s0 + $0x9] sm:$0x1]   ;;  %v108_v8 = vld [vmem:[%s207_s0 + $0x8] sm:$0x1]  }
   0x5   :  { %s137_s30 = smov 72   ;;  %s138_s2 = smov 64   ;;  %v109_v9 = vld [vmem:[%s207_s0 + $0x7] sm:$0x1]   ;;  %v110_v10 = vld [vmem:[%s207_s0 + $0x6] sm:$0x1]  }
   0x6   :  { %13 = vrot.lane.b32.xlu0 %v102_v2, %s133_s16  ;;  %25 = vrot.lane.b32.xlu1 %v104_v3, %s134_s17  ;;  %s139_s7 = smov 56   ;;  %s140_s8 = smov 48   ;;  %v111_v11 = vld [vmem:[%s207_s0 + $0x5] sm:$0x1]   ;;  %v112_v12 = vld [vmem:[%s207_s0 + $0x4] sm:$0x1]  }
   0x7   :  { %s141_s13 = smov 40   ;;  %s142_s14 = smov 32   ;;  %v113_v13 = vld [vmem:[%s207_s0 + $0x3] sm:$0x1]   ;;  %v114_v14 = vld [vmem:[%s207_s0 + $0x2] sm:$0x1]  }
   0x8   :  { %s143_s19 = smov 24   ;;  %s144_s20 = smov 16   ;;  %v115_v15 = vld [vmem:[%s207_s0 + $0x1] sm:$0x1]   ;;  %vm27_vm4 = vcmask 851712   ;;  %vm33_vm5 = vcmask 786112  }
   0x9   :  { %s145_s0 = smov 8   ;;  %vm39_vm6 = vcmask 720512   ;;  %vm45_vm7 = vcmask 654912   ;;  %vm51_vm8 = vcmask 589312   ;;  %vm57_vm9 = vcmask 523712  }
   0xa   :  { %31 = vrot.lane.b32.xlu0 %v105_v4, %s135_s24  ;;  %37 = vrot.lane.b32.xlu1 %v106_v5, %s136_s25  ;;  %vm63_vm10 = vcmask 458112   ;;  %vm69_vm11 = vcmask 392512   ;;  %vm75_vm12 = vcmask 326912   ;;  %vm81_vm13 = vcmask 261312  }
   0xb   :  { %vm87_vm14 = vcmask 195712   ;;  %vm93_vm15 = vcmask 130112  }
   0xe   :  { %43 = vrot.lane.b32.xlu0 %v107_v7, %s137_s30  ;;  %49 = vrot.lane.b32.xlu1 %v108_v8, %s138_s2 }
  0x12   :  { %55 = vrot.lane.b32.xlu0 %v109_v9, %s139_s7  ;;  %61 = vrot.lane.b32.xlu1 %v110_v10, %s140_s8 }
  0x16   :  { %67 = vrot.lane.b32.xlu0 %v111_v11, %s141_s13  ;;  %73 = vrot.lane.b32.xlu1 %v112_v12, %s142_s14 }
  0x1a   :  { %79 = vrot.lane.b32.xlu0 %v113_v13, %s143_s19  ;;  %85 = vrot.lane.b32.xlu1 %v114_v14, %s144_s20 }
  0x1e   :  { %91 = vrot.lane.b32.xlu0 %v115_v15, %s145_s0 }
  0x74   :  { %v8_v16 = vpop.permute.xlu0 %7   ;;  %v20_v17 = vpop.permute.xlu1 %19  }
  0x75   :  { %10 = vst.msk [vmem:[#allocation0] sm:$0x1] %vm9_vm1, %v8_v16  }
  0x78   :  { %v14_v18 = vpop.permute.xlu0 %13   ;;  %v26_v19 = vpop.permute.xlu1 %25  }
  0x79   :  { %16 = vst.msk [vmem:[#allocation0] sm:$0x1] %vm15_vm2, %v14_v18  }
  0x7a   :  { %22 = vst.msk [vmem:[#allocation0] sm:$0x1] %vm21_vm3, %v20_v17  }
  0x7b   :  { %28 = vst.msk [vmem:[#allocation0] sm:$0x1] %vm27_vm4, %v26_v19  }
  0x7c   :  { %v32_v20 = vpop.permute.xlu0 %31   ;;  %v38_v21 = vpop.permute.xlu1 %37  }
  0x7d   :  { %34 = vst.msk [vmem:[#allocation0] sm:$0x1] %vm33_vm5, %v32_v20  }
  0x7e   :  { %40 = vst.msk [vmem:[#allocation0] sm:$0x1] %vm39_vm6, %v38_v21  }
  0x80   :  { %v44_v22 = vpop.permute.xlu0 %43   ;;  %v50_v23 = vpop.permute.xlu1 %49  }
  0x81   :  { %46 = vst.msk [vmem:[#allocation0] sm:$0x1] %vm45_vm7, %v44_v22  }
  0x82   :  { %52 = vst.msk [vmem:[#allocation0] sm:$0x1] %vm51_vm8, %v50_v23  }
  0x84   :  { %v56_v24 = vpop.permute.xlu0 %55   ;;  %v62_v25 = vpop.permute.xlu1 %61  }
  0x85   :  { %58 = vst.msk [vmem:[#allocation0] sm:$0x1] %vm57_vm9, %v56_v24  }
  0x86   :  { %64 = vst.msk [vmem:[#allocation0] sm:$0x1] %vm63_vm10, %v62_v25  }
  0x88   :  { %v68_v26 = vpop.permute.xlu0 %67   ;;  %v74_v27 = vpop.permute.xlu1 %73  }
  0x89   :  { %70 = vst.msk [vmem:[#allocation0] sm:$0x1] %vm69_vm11, %v68_v26  }
  0x8a   :  { %76 = vst.msk [vmem:[#allocation0] sm:$0x1] %vm75_vm12, %v74_v27  }
  0x8c   :  { %v80_v28 = vpop.permute.xlu0 %79   ;;  %v86_v29 = vpop.permute.xlu1 %85  }
  0x8d   :  { %82 = vst.msk [vmem:[#allocation0] sm:$0x1] %vm81_vm13, %v80_v28  }
  0x8e   :  { %88 = vst.msk [vmem:[#allocation0] sm:$0x1] %vm87_vm14, %v86_v29  }
  0x90   :  { %v92_v30 = vpop.permute.xlu0 %91  }
  0x91   :  { %94 = vst.msk [vmem:[#allocation0] sm:$0x1] %vm93_vm15, %v92_v30  }
  0x98   :  { %v98_v31 = vld [vmem:[#allocation0] sm:$0x1] }
  0x99   :  { %100 = vst [vmem:[%s208_s1] sm:$0x1] %v98_v31 }

// kernel: feat_regressor_forward.3
= control target key start
LH: loop header
LB: loop body
LE: loop exit
PB: predicated region body
PF: predicated region fallthrough
CT: control target
= control target key end

     0   :  { %v392_v0 = vmov 0.0   ;;  %vm393_vm0 = vmmov 0   ;;  %vm184_vm2 = vcmask 523264   ;;  %vm248_vm4 = vcmask 261120   ;;  %s503_s3 = inlined_call_operand.vmem [shape: bf16[128,64], index: 3, kind: input, shape index: {}]   ;;  %s504_s4 = inlined_call_operand.vmem [shape: bf16[64,32], index: 4, kind: input, shape index: {}]   ;;  %s505_s0 = inlined_call_operand.vmem [shape: bf16[8,128], index: 0, kind: input, shape index: {}]   ;;  %s506_s1 = inlined_call_operand.vmem [shape: f32[1,128], index: 1, kind: input, shape index: {}]   ;;  %s507_s2 = inlined_call_operand.vmem [shape: f32[1,128], index: 2, kind: input, shape index: {}]   ;;  %s508_s5 = inlined_call_operand.vmem [shape: bf16[32,2], index: 5, kind: input, shape index: {}]   ;;  %s509_s6 = inlined_call_operand.vmem [shape: f32[8,2], index: 6, kind: output, shape index: {}]  }
   0x1   :  { %334 = vmatprep.subr.bf16.mxu0 %v392_v0  ;;  %v376_v1 = vld [vmem:[%s503_s3] sm:$0xff]   ;;  %350 = vmatprep.mubr.msk.bf16.mxu0 %vm393_vm0, %v392_v0  ;;  %v377_v2 = vld [vmem:[%s503_s3 + $0x8] sm:$0xff]   ;;  %v378_v3 = vld [vmem:[%s503_s3 + $0x10] sm:$0xff]   ;;  %vm293_vm5 = vcmask 15360  }
   0x2   :  { %354 = vmatprep.subr.bf16.mxu1 %v392_v0  ;;  %362 = vmatprep.mubr.msk.bf16.mxu1 %vm393_vm0, %v392_v0  ;;  %v379_v4 = vld [vmem:[%s503_s3 + $0x18] sm:$0xff]   ;;  %v384_v5 = vld [vmem:[%s504_s4] sm:$0xff]   ;;  %v385_v7 = vld [vmem:[%s504_s4 + $0x8] sm:$0xff]  }
   0x3   :  { %335 = vmatpush3.bf16.msra.mxu0 %v376_v1  ;;  %v24_v6 = vld [vmem:[%s505_s0] sm:$0xf]  ;;  %355 = vmatpush3.bf16.msra.mxu1 %v384_v5  ;;  %v386_v11 = vld [vmem:[%s504_s4 + $0x10] sm:$0xff]   ;;  %v381_v13 = vld [vmem:[%s503_s3 + $0x28] sm:$0xff]  }
   0x4   :  { %336 = vmatprep.subr.bf16.mxu0 %v392_v0  ;;  %356 = vmatprep.subr.bf16.mxu1 %v392_v0  ;;  %v25_v8 = vunpack.c.l.bf16 %v24_v6  ;;  %v380_v9 = vld [vmem:[%s503_s3 + $0x20] sm:$0xff]   ;;  %v382_v16 = vld [vmem:[%s503_s3 + $0x30] sm:$0xff]   ;;  %v383_v18 = vld [vmem:[%s503_s3 + $0x38] sm:$0xff]  }
   0x5   :  { %v299_v10 = vld [vmem:[%s506_s1] ss:$0 sm:$0xff]  ;;  %v387_v20 = vld [vmem:[%s504_s4 + $0x18] sm:$0xff]   ;;  %v389_v29 = vld [vmem:[%s508_s5 + $0x8] sm:$0xff]  }
   0x6   :  { %v33_v12 = vmul.f32 %v299_v10, %v25_v8  ;;  %v300_v14 = vld [vmem:[%s507_s2] ss:$0 sm:$0xff] }
   0x7   :  { %337 = vmatpush3.bf16.msra.mxu0 %v377_v2  ;;  %357 = vmatpush3.bf16.msra.mxu1 %v385_v7  ;;  %v388_v27 = vld [vmem:[%s508_s5] sm:$0xff]  }
   0x8   :  { %338 = vmatprep.subr.bf16.mxu0 %v392_v0  ;;  %358 = vmatprep.subr.bf16.mxu1 %v392_v0  ;;  %v41_v15 = vadd.f32 %v300_v14, %v33_v12 }
   0xa   :  { %v42_v17 = vmax.f32 %v41_v15, 0.0 }
   0xb   :  { %339 = vmatpush3.bf16.msra.mxu0 %v378_v3  ;;  %359 = vmatpush3.bf16.msra.mxu1 %v386_v11 }
   0xc   :  { %340 = vmatprep.subr.bf16.mxu0 %v392_v0  ;;  %360 = vmatprep.subr.bf16.mxu1 %v392_v0  ;;  %v43_v19 = vpack.c.bf16 %v42_v17, %v42_v17 }
   0xf   :  { %341 = vmatpush3.bf16.msra.mxu0 %v379_v4  ;;  %361 = vmatpush3.bf16.msra.mxu1 %v387_v20 }
  0x10   :  { %342 = vmatprep.subr.bf16.mxu0 %v392_v0  ;;  %366 = vmatprep.subr.bf16.mxu1 %v392_v0 }
  0x13   :  { %343 = vmatpush3.bf16.msra.mxu0 %v380_v9 }
  0x14   :  { %344 = vmatprep.subr.bf16.mxu0 %v392_v0 }
  0x17   :  { %345 = vmatpush3.bf16.msra.mxu0 %v381_v13 }
  0x18   :  { %346 = vmatprep.subr.bf16.mxu0 %v392_v0 }
  0x1b   :  { %347 = vmatpush3.bf16.msra.mxu0 %v382_v16 }
  0x1c   :  { %348 = vmatprep.subr.bf16.mxu0 %v392_v0 }
  0x1f   :  { %349 = vmatpush3.bf16.msra.mxu0 %v383_v18 }
  0x22   :  { %351 = vmatmul.mubr.bf16.vlgmr.msra.gmra.mrb[0].mxu0 %v43_v19 }
  0xf5   :  { %v142_v21 = vpop.f32.mrb[0].mxu0 }
  0xf6   :  { %vm148_vm1 = vcmp.gt.f32.partialorder %v142_v21, 0.0  ;;  %v149_v22 = vmul.f32 0.01, %v142_v21  ;;  %v352_v23 = vpop.f32.mrb[1].mxu0 }
  0xf7   :  { %v145_v24 = vpop.f32.mrb[2].mxu0 }
  0xf8   :  { %v150_v25 = vsel %vm148_vm1, %v142_v21, %v149_v22  ;;  %v353_v26 = vpop.f32.mrb[3].mxu0 }
  0xf9   :  { %v151_v28 = vpack.c.bf16 %v150_v25, %v150_v25 }
  0xfb   :  { %363 = vmatmul.mubr.msk.bf16.vlgmr.msra.gmra.mrb[0].mxu1 %vm184_vm2, %v151_v28 }
  0xfc   :  { %367 = vmatpush3.bf16.msra.mxu1 %v388_v27  ;;  %370 = vmatprep.mubr.msk.bf16.mxu1 %vm393_vm0, %v392_v0 }
  0xfd   :  { %368 = vmatprep.subr.bf16.mxu1 %v392_v0 }
 0x100   :  { %369 = vmatpush3.bf16.msra.mxu1 %v389_v29 }
 0x1ce   :  { %v222_v30 = vpop.f32.mrb[0].mxu1 }
 0x1cf   :  { %vm228_vm3 = vcmp.gt.f32.partialorder %v222_v30, 0.0  ;;  %v229_v31 = vmul.f32 0.01, %v222_v30  ;;  %v364_v32 = vpop.f32.mrb[1].mxu1 }
 0x1d0   :  { %v225_v33 = vpop.f32.mrb[2].mxu1 }
 0x1d1   :  { %v230_v34 = vsel %vm228_vm3, %v222_v30, %v229_v31  ;;  %v365_v35 = vpop.f32.mrb[3].mxu1 }
 0x1d2   :  { %v231_v36 = vpack.c.bf16 %v230_v34, %v230_v34 }
 0x1d4   :  { %371 = vmatmul.mubr.msk.bf16.vlgmr.msra.gmra.mrb[4].mxu1 %vm248_vm4, %v231_v36 }
 0x2a7   :  { %v286_v37 = vpop.f32.mrb[4].mxu1 }
 0x2a8   :  { %390 = vtanh.f32 %v286_v37  ;;  %v372_v38 = vpop.f32.mrb[5].mxu1 }
 0x2a9   :  { %v289_v39 = vpop.f32.mrb[6].mxu1 }
 0x2aa   :  { %v373_v40 = vpop.f32.mrb[7].mxu1 }
 0x2b2   :  { %v391_v41 = vpop.eup %390 }
 0x2b3   :  { %294 = vst.msk [vmem:[%s509_s6] sm:$0xff] %vm293_vm5, %v391_v41 }

// kernel: feat_regressor_forward.2
= control target key start
LH: loop header
LB: loop body
LE: loop exit
PB: predicated region body
PF: predicated region fallthrough
CT: control target
= control target key end

     0   :  { %v529_v38 = vmov 0.0   ;;  %s688_s3 = inlined_call_operand.vmem [shape: bf16[256,128], index: 3, kind: input, shape index: {}]   ;;  %s689_s2 = inlined_call_operand.vmem [shape: bf16[256,128], index: 2, kind: input, shape index: {}]   ;;  %s690_s1 = inlined_call_operand.vmem [shape: bf16[8,256], index: 1, kind: input, shape index: {}]   ;;  %s691_s0 = inlined_call_operand.vmem [shape: bf16[8,256], index: 0, kind: input, shape index: {}]   ;;  %s692_s5 = inlined_call_operand.vmem [shape: f32[1,128], index: 5, kind: output, shape index: {1}]   ;;  %s693_s6 = inlined_call_operand.vmem [shape: f32[1,128], index: 6, kind: output, shape index: {2}]   ;;  %s694_s4 = inlined_call_operand.vmem [shape: bf16[8,128], index: 4, kind: output, shape index: {0}]  }
   0x1   :  { %v493_v0 = vld [vmem:[%s688_s3 + $0x40] sm:$0xff]   ;;  %v497_v4 = vld [vmem:[%s688_s3 + $0x48] sm:$0xff]   ;;  %v501_v8 = vld [vmem:[%s688_s3 + $0x50] sm:$0xff]   ;;  %25 = vst [vmem:[%s692_s5] sm:$0x1] %v529_v38 }
   0x2   :  { %v494_v1 = vld [vmem:[%s689_s2 + $0x40] sm:$0xff]   ;;  %448 = vmatprep.subr.bf16.mxu0 %v493_v0  ;;  %v498_v5 = vld [vmem:[%s689_s2 + $0x48] sm:$0xff]   ;;  %v502_v9 = vld [vmem:[%s689_s2 + $0x50] sm:$0xff]   ;;  %26 = vst [vmem:[%s693_s6] sm:$0x1] %v529_v38 }
   0x3   :  { %v495_v2 = vld [vmem:[%s688_s3] sm:$0xff]   ;;  %470 = vmatprep.subr.bf16.mxu1 %v494_v1  ;;  %v499_v6 = vld [vmem:[%s688_s3 + $0x8] sm:$0xff]   ;;  %v503_v10 = vld [vmem:[%s688_s3 + $0x10] sm:$0xff]  }
   0x4   :  { %v496_v3 = vld [vmem:[%s689_s2] sm:$0xff]   ;;  %449 = vmatpush3.bf16.msra.mxu0 %v495_v2  ;;  %v500_v7 = vld [vmem:[%s689_s2 + $0x8] sm:$0xff]   ;;  %v504_v11 = vld [vmem:[%s689_s2 + $0x10] sm:$0xff]  }
   0x5   :  { %471 = vmatpush3.bf16.msra.mxu1 %v496_v3  ;;  %450 = vmatprep.subr.bf16.mxu0 %v497_v4  ;;  %v505_v12 = vld [vmem:[%s688_s3 + $0x58] sm:$0xff]   ;;  %v509_v16 = vld [vmem:[%s688_s3 + $0x60] sm:$0xff]   ;;  %v513_v20 = vld [vmem:[%s688_s3 + $0x68] sm:$0xff]  }
   0x6   :  { %472 = vmatprep.subr.bf16.mxu1 %v498_v5  ;;  %v506_v13 = vld [vmem:[%s689_s2 + $0x58] sm:$0xff]   ;;  %v510_v17 = vld [vmem:[%s689_s2 + $0x60] sm:$0xff]   ;;  %v514_v21 = vld [vmem:[%s689_s2 + $0x68] sm:$0xff]  }
   0x7   :  { %v507_v14 = vld [vmem:[%s688_s3 + $0x18] sm:$0xff]   ;;  %v511_v18 = vld [vmem:[%s688_s3 + $0x20] sm:$0xff]   ;;  %v515_v22 = vld [vmem:[%s688_s3 + $0x28] sm:$0xff]  }
   0x8   :  { %451 = vmatpush3.bf16.msra.mxu0 %v499_v6  ;;  %v508_v15 = vld [vmem:[%s689_s2 + $0x18] sm:$0xff]   ;;  %v512_v19 = vld [vmem:[%s689_s2 + $0x20] sm:$0xff]   ;;  %v516_v23 = vld [vmem:[%s689_s2 + $0x28] sm:$0xff]  }
   0x9   :  { %473 = vmatpush3.bf16.msra.mxu1 %v500_v7  ;;  %452 = vmatprep.subr.bf16.mxu0 %v501_v8  ;;  %v517_v24 = vld [vmem:[%s688_s3 + $0x70] sm:$0xff]   ;;  %v521_v28 = vld [vmem:[%s688_s3 + $0x78] sm:$0xff]   ;;  %v60_v32 = vld [vmem:[%s690_s1] sm:$0xff] }
   0xa   :  { %474 = vmatprep.subr.bf16.mxu1 %v502_v9  ;;  %v518_v25 = vld [vmem:[%s689_s2 + $0x70] sm:$0xff]   ;;  %v522_v29 = vld [vmem:[%s689_s2 + $0x78] sm:$0xff]   ;;  %v27_v33 = vld [vmem:[%s691_s0] sm:$0xff]  ;;  %v412_v34 = vcombine.low %v60_v32, %v60_v32  ;;  %v413_v35 = vcombine.high %v60_v32, %v60_v32 }
   0xb   :  { %v519_v26 = vld [vmem:[%s688_s3 + $0x30] sm:$0xff]   ;;  %v523_v30 = vld [vmem:[%s688_s3 + $0x38] sm:$0xff]   ;;  %v430_v36 = vcombine.low %v27_v33, %v27_v33  ;;  %v431_v37 = vcombine.high %v27_v33, %v27_v33  ;;  %v381_v61 = vld [vmem:[%s692_s5] sm:$0x1] }
   0xc   :  { %453 = vmatpush3.bf16.msra.mxu0 %v503_v10  ;;  %v520_v27 = vld [vmem:[%s689_s2 + $0x30] sm:$0xff]   ;;  %v524_v31 = vld [vmem:[%s689_s2 + $0x38] sm:$0xff]   ;;  %228 = vmatprep.mubr.bf16.mxu0 %v413_v35  ;;  %v390_v0 = vld [vmem:[%s693_s6] sm:$0x1] }
   0xd   :  { %475 = vmatpush3.bf16.msra.mxu1 %v504_v11  ;;  %454 = vmatprep.subr.bf16.mxu0 %v505_v12 }
   0xe   :  { %476 = vmatprep.subr.bf16.mxu1 %v506_v13  ;;  %371 = vmatprep.mubr.bf16.mxu1 %v431_v37 }
  0x10   :  { %455 = vmatpush3.bf16.msra.mxu0 %v507_v14 }
  0x11   :  { %477 = vmatpush3.bf16.msra.mxu1 %v508_v15  ;;  %456 = vmatprep.subr.bf16.mxu0 %v509_v16 }
  0x12   :  { %478 = vmatprep.subr.bf16.mxu1 %v510_v17 }
  0x14   :  { %457 = vmatpush3.bf16.msra.mxu0 %v511_v18 }
  0x15   :  { %479 = vmatpush3.bf16.msra.mxu1 %v512_v19  ;;  %458 = vmatprep.subr.bf16.mxu0 %v513_v20 }
  0x16   :  { %480 = vmatprep.subr.bf16.mxu1 %v514_v21 }
  0x18   :  { %459 = vmatpush3.bf16.msra.mxu0 %v515_v22 }
  0x19   :  { %481 = vmatpush3.bf16.msra.mxu1 %v516_v23  ;;  %460 = vmatprep.subr.bf16.mxu0 %v517_v24 }
  0x1a   :  { %482 = vmatprep.subr.bf16.mxu1 %v518_v25 }
  0x1c   :  { %461 = vmatpush3.bf16.msra.mxu0 %v519_v26 }
  0x1d   :  { %483 = vmatpush3.bf16.msra.mxu1 %v520_v27  ;;  %462 = vmatprep.subr.bf16.mxu0 %v521_v28 }
  0x1e   :  { %484 = vmatprep.subr.bf16.mxu1 %v522_v29 }
  0x20   :  { %463 = vmatpush3.bf16.msra.mxu0 %v523_v30 }
  0x21   :  { %485 = vmatpush3.bf16.msra.mxu1 %v524_v31 }
  0x23   :  { %229 = vmatmul.mubr.bf16.vlgmr.msra.gmra.mrb[0].mxu0 %v412_v34 }
  0x24   :  { %372 = vmatmul.mubr.bf16.vlgmr.msra.gmra.mrb[0].mxu1 %v430_v36 }
  0xf6   :  { %v464_v39 = vpop.f32.mrb[0].mxu0 }
  0xf7   :  { %v486_v40 = vpop.f32.mrb[0].mxu1  ;;  %v465_v41 = vpop.f32.mrb[1].mxu0 }
  0xf8   :  { %v487_v42 = vpop.f32.mrb[1].mxu1  ;;  %v466_v43 = vadd.f32 %v465_v41, %v464_v39  ;;  %v467_v45 = vpop.f32.mrb[2].mxu0 }
  0xf9   :  { %v488_v44 = vadd.f32 %v487_v42, %v486_v40  ;;  %v489_v46 = vpop.f32.mrb[2].mxu1  ;;  %v468_v47 = vpop.f32.mrb[3].mxu0 }
  0xfa   :  { %v490_v48 = vpop.f32.mrb[3].mxu1 }
  0xfb   :  { %v374_v49 = vadd.f32 %v488_v44, %v466_v43 }
  0xfd   :  { %v379_v50 = vpack.c.bf16 %v374_v49, %v374_v49  ;;  %v382_v51 = vrot.slane %v374_v49, 4  ;;  %v391_v52 = vmul.f32 %v374_v49, %v374_v49 }
  0xff   :  { %380 = vst [vmem:[%s694_s4] sm:$0xf] %v379_v50  ;;  %v383_v53 = vadd.f32 %v382_v51, %v374_v49  ;;  %v392_v54 = vrot.slane %v391_v52, 4 }
 0x101   :  { %v384_v55 = vrot.slane %v383_v53, 2  ;;  %v393_v56 = vadd.f32 %v392_v54, %v391_v52 }
 0x103   :  { %v385_v57 = vadd.f32 %v384_v55, %v383_v53  ;;  %v394_v58 = vrot.slane %v393_v56, 2 }
 0x105   :  { %v386_v59 = vrot.slane %v385_v57, 1  ;;  %v395_v60 = vadd.f32 %v394_v58, %v393_v56 }
 0x107   :  { %v387_v62 = vadd.f32 %v386_v59, %v385_v57  ;;  %v396_v63 = vrot.slane %v395_v60, 1 }
 0x109   :  { %v388_v1 = vadd.f32 %v387_v62, %v381_v61  ;;  %v397_v2 = vadd.f32 %v396_v63, %v395_v60 }
 0x10b   :  { %389 = vst [vmem:[%s692_s5] sm:$0x1] %v388_v1  ;;  %v398_v3 = vadd.f32 %v397_v2, %v390_v0 }
 0x10d   :  { %399 = vst [vmem:[%s693_s6] sm:$0x1] %v398_v3 }

</bundles_post_ra>
